<compile_context>
chip_gen: v7x
topology: tpu7x:2x2x1
jax: 0.10.0
libtpu: 0.0.40
codegen_flags: <defaults>
</compile_context>

<pallas_src>
import math
import numpy as np
import jax
import jax.numpy as jnp
from jax.experimental import pallas as pl
from jax.experimental.pallas import tpu as pltpu

_VMEM_LIMIT = 32 * 1024 * 1024   # explicit scoped-VMEM budget with headroom


# -----------------------------------------------------------------------------
# Kernel 1 (parallel over B and T): x-dependent half of all three gates.
#   A     = concat_j S[j] @ x[b, t]           (N, J*Fin)   aggregate first
#   gx[g] = A @ Wx[g] + bias[g]               (N, H)       one fused-J dot/gate
# -----------------------------------------------------------------------------
def _gconv_x_kernel(x_ref, s_ref, wx_ref, b_ref, gx_ref):
    J = s_ref.shape[0]
    x = x_ref[...]                                              # (N, Fin) bf16
    parts = [jnp.dot(s_ref[j], x, preferred_element_type=jnp.float32)
             for j in range(J)]                                 # O(N^2)*Fin term
    a = jnp.concatenate(parts, axis=-1).astype(jnp.bfloat16)    # (N, J*Fin)
    for g in range(3):                                          # r, u, c
        proj = jnp.dot(a, wx_ref[g], preferred_element_type=jnp.float32)
        gx_ref[g] = (proj + b_ref[g]).astype(gx_ref.dtype)


def gconv_x_all(x_btnf, s_bf16, wx, bias):
    """x_btnf: (B, T, N, Fin) bf16 -> gx: (B, T, 3, N, H) bf16."""
    B, T, N, Fin = x_btnf.shape
    J = s_bf16.shape[0]
    H = wx.shape[-1]

    def const(shape):
        n = len(shape)
        return pl.BlockSpec(shape, lambda b, t, n=n: (0,) * n)

    return pl.pallas_call(
        _gconv_x_kernel,
        out_shape=jax.ShapeDtypeStruct((B, T, 3, N, H), jnp.bfloat16),
        grid=(B, T),
        in_specs=[
            pl.BlockSpec((None, None, N, Fin), lambda b, t: (b, t, 0, 0)),
            const((J, N, N)),            # supports, constant across grid
            const((3, J * Fin, H)),      # fused-J per-gate weights (bf16)
            const((3, 1, H)),            # per-gate bias (f32)
        ],
        out_specs=pl.BlockSpec((None, None, 3, N, H),
                               lambda b, t: (b, t, 0, 0, 0)),
        compiler_params=pltpu.CompilerParams(
            dimension_semantics=("parallel", "parallel"),
            vmem_limit_bytes=_VMEM_LIMIT),
    )(x_btnf, s_bf16, wx, bias)


# -----------------------------------------------------------------------------
# Kernel 2 (streamed per timestep): sequential GRU recurrence.
#   A_h    = concat_j S[j] @ h                  (N, J*H)
#   g_pre  = gx[g] + A_h @ Wh[g]                (per gate, one fused-J dot)
#   h      = u*h + (1-u)*tanh(c_pre)            (f32 elementwise)
# grid = (B, T): batch 'parallel' (megacore on v7x), time 'arbitrary' (serial).
# -----------------------------------------------------------------------------
def _dcgru_step_kernel(gx_ref, s_ref, wh_ref, out_ref, h_scr):
    t = pl.program_id(1)

    @pl.when(t == 0)
    def _():                                    # new batch sequence -> reset h
        h_scr[...] = jnp.zeros_like(h_scr)

    J = s_ref.shape[0]
    h = h_scr[...]                              # (N, H) f32 carried state

    def diffuse(v_f32):
        v = v_f32.astype(jnp.bfloat16)
        parts = [jnp.dot(s_ref[j], v, preferred_element_type=jnp.float32)
                 for j in range(J)]
        return jnp.concatenate(parts, axis=-1).astype(jnp.bfloat16)   # (N, J*H)

    ah = diffuse(h)
    r = jax.nn.sigmoid(
        gx_ref[0].astype(jnp.float32) +
        jnp.dot(ah, wh_ref[0], preferred_element_type=jnp.float32))
    u = jax.nn.sigmoid(
        gx_ref[1].astype(jnp.float32) +
        jnp.dot(ah, wh_ref[1], preferred_element_type=jnp.float32))

    arh = diffuse(r * h)
    c = jnp.tanh(
        gx_ref[2].astype(jnp.float32) +
        jnp.dot(arh, wh_ref[2], preferred_element_type=jnp.float32))

    h_new = u * h + (1.0 - u) * c               # f32 gate math / update
    h_scr[...] = h_new
    out_ref[...] = h_new


def dcgru_recurrence(gx, s_bf16, wh):
    """gx: (B, T, 3, N, H) bf16 -> hidden sequence (B, T, N, H) f32."""
    B, T, _, N, H = gx.shape
    J = s_bf16.shape[0]

    def const(shape):
        n = len(shape)
        return pl.BlockSpec(shape, lambda b, t, n=n: (0,) * n)

    return pl.pallas_call(
        _dcgru_step_kernel,
        out_shape=jax.ShapeDtypeStruct((B, T, N, H), jnp.float32),
        grid=(B, T),
        in_specs=[
            pl.BlockSpec((None, None, 3, N, H), lambda b, t: (b, t, 0, 0, 0)),
            const((J, N, N)),
            const((3, J * H, H)),
        ],
        out_specs=pl.BlockSpec((None, None, N, H), lambda b, t: (b, t, 0, 0)),
        scratch_shapes=[pltpu.VMEM((N, H), jnp.float32)],   # carried hidden h
        compiler_params=pltpu.CompilerParams(
            dimension_semantics=("parallel", "arbitrary"),
            vmem_limit_bytes=_VMEM_LIMIT),
    )(gx, s_bf16, wh)


# -----------------------------------------------------------------------------
# Encoder: stack layers; per layer = parallel x-precompute + streamed recurrence.
# -----------------------------------------------------------------------------
def pack_layer(p, fin, hidden):
    """Split (J, fin+H, H) GraphConv weights into fused-J kernel layouts."""
    J = p["w_r"].shape[0]

    def split(w):   # x-part (J*fin, H) and h-part (J*H, H), row-stacked over j
        return (w[:, :fin, :].reshape(J * fin, hidden),
                w[:, fin:, :].reshape(J * hidden, hidden))

    wxr, whr = split(p["w_r"])
    wxu, whu = split(p["w_u"])
    wxc, whc = split(p["w_c"])
    wx = jnp.stack([wxr, wxu, wxc]).astype(jnp.bfloat16)        # (3, J*fin, H)
    wh = jnp.stack([whr, whu, whc]).astype(jnp.bfloat16)        # (3, J*H,  H)
    bias = jnp.stack([p["b_r"], p["b_u"], p["b_c"]])[:, None, :].astype(jnp.float32)
    return wx, wh, bias


def dcrnn_encoder(x_btnf, supports, params):
    """PyTorch-equivalent forward: returns [final hidden of each layer]."""
    B, T, N, Fin = x_btnf.shape
    H = params[0]["b_r"].shape[-1]
    s_bf16 = supports.astype(jnp.bfloat16)      # (J, N, N): no block-diag blowup

    cur = x_btnf
    fin = Fin
    output_hidden = []
    for p in params:
        wx, wh, bias = pack_layer(p, fin, H)
        gx = gconv_x_all(cur.astype(jnp.bfloat16), s_bf16, wx, bias)
        out_seq = dcgru_recurrence(gx, s_bf16, wh)   # (B, T, N, H) f32
        output_hidden.append(out_seq[:, -1])         # hidden at last timestep
        cur = out_seq                                # feeds next layer
        fin = H
    return output_hidden


# -----------------------------------------------------------------------------
# Deterministic parameter init (mirrors GraphConv: xavier_normal weight of
# shape (J, Fin+H, H) per gate, zero bias).
# -----------------------------------------------------------------------------
def init_params(key, num_layers, input_size, hidden_size, num_matrices):
    params = []
    fin = input_size
    for _ in range(num_layers):
        layer = {}
        for gate in ("r", "u", "c"):
            key, k = jax.random.split(key)
            fan_in = (fin + hidden_size) * hidden_size
            fan_out = num_matrices * hidden_size
            std = 1.414 * math.sqrt(2.0 / (fan_in + fan_out))
            w = std * jax.random.normal(
                k, (num_matrices, fin + hidden_size, hidden_size), jnp.float32)
            layer[f"w_{gate}"] = w
            layer[f"b_{gate}"] = jnp.zeros((hidden_size,), jnp.float32)
        params.append(layer)
        fin = hidden_size
    return params


# -----------------------------------------------------------------------------
# Pure-JAX reference (direct transcription of the PyTorch einsums, f32).
# -----------------------------------------------------------------------------
def _graph_conv_ref(x, supports, w, b):
    aggr = jnp.einsum("jkm,iml->ijkl", supports, x)
    return jnp.einsum("ijkl,jlm->ikm", aggr, w) + b


def _encoder_ref(x_btnf, supports, params):
    B, T, N, _ = x_btnf.shape
    H = params[0]["b_r"].shape[-1]
    cur = x_btnf
    hiddens = []
    for p in params:
        h = jnp.zeros((B, N, H), jnp.float32)
        outs = []
        for t in range(T):
            x = cur[:, t]
            xh = jnp.concatenate([x, h], axis=2)
            r = jax.nn.sigmoid(_graph_conv_ref(xh, supports, p["w_r"], p["b_r"]))
            u = jax.nn.sigmoid(_graph_conv_ref(xh, supports, p["w_u"], p["b_u"]))
            xrh = jnp.concatenate([x, r * h], axis=2)
            c = jnp.tanh(_graph_conv_ref(xrh, supports, p["w_c"], p["b_c"]))
            h = u * h + (1.0 - u) * c
            outs.append(h)
        hiddens.append(h)
        cur = jnp.stack(outs, axis=1)
    return hiddens


if __name__ == "__main__":
    B, T, N, F, H = 2, 8, 16, 4, 32      # batch, seq, num_nodes, input, hidden
    NUM_LAYERS, J = 2, 2                 # layers, number of support matrices

    key = jax.random.PRNGKey(0)
    k_x, k_s, k_p = jax.random.split(key, 3)

    x = jax.random.normal(k_x, (B, T, N, F), jnp.float32)
    raw = jax.random.uniform(k_s, (J, N, N), jnp.float32)
    supports = raw / jnp.sum(raw, axis=-1, keepdims=True)   # row-stochastic

    params = init_params(k_p, NUM_LAYERS, F, H, J)

    hiddens = jax.jit(dcrnn_encoder)(x, supports, params)
    hiddens = [jax.block_until_ready(h) for h in hiddens]

    ref = _encoder_ref(x, supports, params)
    for got, want in zip(hiddens, ref):
        # bf16 MXU operands -> looser tolerance than the f32-only v1 kernel.
        np.testing.assert_allclose(np.asarray(got), np.asarray(want),
                                   rtol=3e-2, atol=3e-2)

    print("KERNEL_OK")
</pallas_src>

<mosaic_0001>
module attributes {stable_mosaic.version = 11 : i64} {
  func.func @_gconv_x_kernel(%arg0: i32, %arg1: i32, %arg2: memref<1x1x16x4xbf16, #tpu.memory_space<vmem>>, %arg3: memref<2x16x16xbf16, #tpu.memory_space<vmem>>, %arg4: memref<3x8x32xbf16, #tpu.memory_space<vmem>>, %arg5: memref<3x1x32xf32, #tpu.memory_space<vmem>>, %arg6: memref<1x1x3x16x32xbf16, #tpu.memory_space<vmem>>) attributes {dimension_semantics = [#tpu.dimension_semantics<parallel>, #tpu.dimension_semantics<parallel>], iteration_bounds = array<i64: 2, 8>, scalar_prefetch = 0 : i64, scratch_operands = 0 : i64, tpu.core_type = #tpu.core_type<tc>, window_params = [{transform_indices = @transform_0, window_bounds = array<i64: 1, 1, 16, 4>}, {pipeline_mode = #tpu.pipeline_mode<synchronous>, transform_indices = @transform_1, window_bounds = array<i64: 2, 16, 16>}, {pipeline_mode = #tpu.pipeline_mode<synchronous>, transform_indices = @transform_2, window_bounds = array<i64: 3, 8, 32>}, {pipeline_mode = #tpu.pipeline_mode<synchronous>, transform_indices = @transform_3, window_bounds = array<i64: 3, 1, 32>}, {transform_indices = @transform_4, window_bounds = array<i64: 1, 1, 3, 16, 32>}]} {
    %c0 = arith.constant 0 : index
    %c0_0 = arith.constant 0 : index
    %c0_1 = arith.constant 0 : index
    %c0_2 = arith.constant 0 : index
    %0 = vector.load %arg2[%c0, %c0_0, %c0_1, %c0_2] : memref<1x1x16x4xbf16, #tpu.memory_space<vmem>>, vector<1x1x16x4xbf16>
    %1 = vector.shape_cast %0 : vector<1x1x16x4xbf16> to vector<16x4xbf16>
    %c0_3 = arith.constant 0 : index
    %c0_4 = arith.constant 0 : index
    %c0_5 = arith.constant 0 : index
    %2 = vector.load %arg3[%c0_3, %c0_4, %c0_5] : memref<2x16x16xbf16, #tpu.memory_space<vmem>>, vector<1x16x16xbf16>
    %3 = vector.shape_cast %2 : vector<1x16x16xbf16> to vector<16x16xbf16>
    %cst = arith.constant dense<0.000000e+00> : vector<16x4xf32>
    %4 = tpu.matmul %3, %1, %cst {dimension_numbers = #tpu.dot_dimension_numbers<[1], [0], [0], [1], [0, 0, 1, 1], [], []>} : vector<16x16xbf16>, vector<16x4xbf16>, vector<16x4xf32> -> vector<16x4xf32>
    %c1 = arith.constant 1 : index
    %c0_6 = arith.constant 0 : index
    %c0_7 = arith.constant 0 : index
    %5 = vector.load %arg3[%c1, %c0_6, %c0_7] : memref<2x16x16xbf16, #tpu.memory_space<vmem>>, vector<1x16x16xbf16>
    %6 = vector.shape_cast %5 : vector<1x16x16xbf16> to vector<16x16xbf16>
    %cst_8 = arith.constant dense<0.000000e+00> : vector<16x4xf32>
    %7 = tpu.matmul %6, %1, %cst_8 {dimension_numbers = #tpu.dot_dimension_numbers<[1], [0], [0], [1], [0, 0, 1, 1], [], []>} : vector<16x16xbf16>, vector<16x4xbf16>, vector<16x4xf32> -> vector<16x4xf32>
    %8 = tpu.concatenate %4, %7 in 1 : vector<16x4xf32>, vector<16x4xf32> -> vector<16x8xf32>
    %9 = arith.truncf %8 : vector<16x8xf32> to vector<16x8xbf16>
    %c0_9 = arith.constant 0 : index
    %c0_10 = arith.constant 0 : index
    %c0_11 = arith.constant 0 : index
    %10 = vector.load %arg4[%c0_9, %c0_10, %c0_11] : memref<3x8x32xbf16, #tpu.memory_space<vmem>>, vector<1x8x32xbf16>
    %11 = vector.shape_cast %10 : vector<1x8x32xbf16> to vector<8x32xbf16>
    %cst_12 = arith.constant dense<0.000000e+00> : vector<16x32xf32>
    %12 = tpu.matmul %9, %11, %cst_12 {dimension_numbers = #tpu.dot_dimension_numbers<[1], [0], [0], [1], [0, 0, 1, 1], [], []>} : vector<16x8xbf16>, vector<8x32xbf16>, vector<16x32xf32> -> vector<16x32xf32>
    %c0_13 = arith.constant 0 : index
    %c0_14 = arith.constant 0 : index
    %c0_15 = arith.constant 0 : index
    %13 = vector.load %arg5[%c0_13, %c0_14, %c0_15] : memref<3x1x32xf32, #tpu.memory_space<vmem>>, vector<1x1x32xf32>
    %14 = vector.shape_cast %13 : vector<1x1x32xf32> to vector<1x32xf32>
    %15 = vector.broadcast %14 : vector<1x32xf32> to vector<16x32xf32>
    %16 = arith.addf %12, %15 : vector<16x32xf32>
    %17 = arith.truncf %16 : vector<16x32xf32> to vector<16x32xbf16>
    %c0_16 = arith.constant 0 : index
    %c0_17 = arith.constant 0 : index
    %c0_18 = arith.constant 0 : index
    %c0_19 = arith.constant 0 : index
    %c0_20 = arith.constant 0 : index
    %18 = vector.load %arg6[%c0_16, %c0_17, %c0_18, %c0_19, %c0_20] : memref<1x1x3x16x32xbf16, #tpu.memory_space<vmem>>, vector<1x1x1x16x32xbf16>
    %19 = vector.shape_cast %18 : vector<1x1x1x16x32xbf16> to vector<16x32xbf16>
    %20 = vector.shape_cast %17 : vector<16x32xbf16> to vector<1x1x1x16x32xbf16>
    tpu.vector_store %arg6[%c0_16, %c0_17, %c0_18, %c0_19, %c0_20], %20 {strides = array<i32>} : memref<1x1x3x16x32xbf16, #tpu.memory_space<vmem>>, vector<1x1x1x16x32xbf16>,
    %c1_21 = arith.constant 1 : index
    %c0_22 = arith.constant 0 : index
    %c0_23 = arith.constant 0 : index
    %21 = vector.load %arg4[%c1_21, %c0_22, %c0_23] : memref<3x8x32xbf16, #tpu.memory_space<vmem>>, vector<1x8x32xbf16>
    %22 = vector.shape_cast %21 : vector<1x8x32xbf16> to vector<8x32xbf16>
    %cst_24 = arith.constant dense<0.000000e+00> : vector<16x32xf32>
    %23 = tpu.matmul %9, %22, %cst_24 {dimension_numbers = #tpu.dot_dimension_numbers<[1], [0], [0], [1], [0, 0, 1, 1], [], []>} : vector<16x8xbf16>, vector<8x32xbf16>, vector<16x32xf32> -> vector<16x32xf32>
    %c1_25 = arith.constant 1 : index
    %c0_26 = arith.constant 0 : index
    %c0_27 = arith.constant 0 : index
    %24 = vector.load %arg5[%c1_25, %c0_26, %c0_27] : memref<3x1x32xf32, #tpu.memory_space<vmem>>, vector<1x1x32xf32>
    %25 = vector.shape_cast %24 : vector<1x1x32xf32> to vector<1x32xf32>
    %26 = vector.broadcast %25 : vector<1x32xf32> to vector<16x32xf32>
    %27 = arith.addf %23, %26 : vector<16x32xf32>
    %28 = arith.truncf %27 : vector<16x32xf32> to vector<16x32xbf16>
    %c0_28 = arith.constant 0 : index
    %c0_29 = arith.constant 0 : index
    %c1_30 = arith.constant 1 : index
    %c0_31 = arith.constant 0 : index
    %c0_32 = arith.constant 0 : index
    %29 = vector.load %arg6[%c0_28, %c0_29, %c1_30, %c0_31, %c0_32] : memref<1x1x3x16x32xbf16, #tpu.memory_space<vmem>>, vector<1x1x1x16x32xbf16>
    %30 = vector.shape_cast %29 : vector<1x1x1x16x32xbf16> to vector<16x32xbf16>
    %31 = vector.shape_cast %28 : vector<16x32xbf16> to vector<1x1x1x16x32xbf16>
    tpu.vector_store %arg6[%c0_28, %c0_29, %c1_30, %c0_31, %c0_32], %31 {strides = array<i32>} : memref<1x1x3x16x32xbf16, #tpu.memory_space<vmem>>, vector<1x1x1x16x32xbf16>,
    %c2 = arith.constant 2 : index
    %c0_33 = arith.constant 0 : index
    %c0_34 = arith.constant 0 : index
    %32 = vector.load %arg4[%c2, %c0_33, %c0_34] : memref<3x8x32xbf16, #tpu.memory_space<vmem>>, vector<1x8x32xbf16>
    %33 = vector.shape_cast %32 : vector<1x8x32xbf16> to vector<8x32xbf16>
    %cst_35 = arith.constant dense<0.000000e+00> : vector<16x32xf32>
    %34 = tpu.matmul %9, %33, %cst_35 {dimension_numbers = #tpu.dot_dimension_numbers<[1], [0], [0], [1], [0, 0, 1, 1], [], []>} : vector<16x8xbf16>, vector<8x32xbf16>, vector<16x32xf32> -> vector<16x32xf32>
    %c2_36 = arith.constant 2 : index
    %c0_37 = arith.constant 0 : index
    %c0_38 = arith.constant 0 : index
    %35 = vector.load %arg5[%c2_36, %c0_37, %c0_38] : memref<3x1x32xf32, #tpu.memory_space<vmem>>, vector<1x1x32xf32>
    %36 = vector.shape_cast %35 : vector<1x1x32xf32> to vector<1x32xf32>
    %37 = vector.broadcast %36 : vector<1x32xf32> to vector<16x32xf32>
    %38 = arith.addf %34, %37 : vector<16x32xf32>
    %39 = arith.truncf %38 : vector<16x32xf32> to vector<16x32xbf16>
    %c0_39 = arith.constant 0 : index
    %c0_40 = arith.constant 0 : index
    %c2_41 = arith.constant 2 : index
    %c0_42 = arith.constant 0 : index
    %c0_43 = arith.constant 0 : index
    %40 = vector.load %arg6[%c0_39, %c0_40, %c2_41, %c0_42, %c0_43] : memref<1x1x3x16x32xbf16, #tpu.memory_space<vmem>>, vector<1x1x1x16x32xbf16>
    %41 = vector.shape_cast %40 : vector<1x1x1x16x32xbf16> to vector<16x32xbf16>
    %42 = vector.shape_cast %39 : vector<16x32xbf16> to vector<1x1x1x16x32xbf16>
    tpu.vector_store %arg6[%c0_39, %c0_40, %c2_41, %c0_42, %c0_43], %42 {strides = array<i32>} : memref<1x1x3x16x32xbf16, #tpu.memory_space<vmem>>, vector<1x1x1x16x32xbf16>,
    return
  }
  func.func @transform_0(%arg0: i32, %arg1: i32) -> (i32, i32, i32, i32) {
    %c0_i32 = arith.constant 0 : i32
    %c0_i32_0 = arith.constant 0 : i32
    %c0_i32_1 = arith.constant 0 : i32
    return %arg0, %arg1, %c0_i32, %c0_i32_0 : i32, i32, i32, i32
  }
  func.func @transform_1(%arg0: i32, %arg1: i32) -> (i32, i32, i32) {
    %c0_i32 = arith.constant 0 : i32
    %c0_i32_0 = arith.constant 0 : i32
    %c0_i32_1 = arith.constant 0 : i32
    %c0_i32_2 = arith.constant 0 : i32
    return %c0_i32, %c0_i32_0, %c0_i32_1 : i32, i32, i32
  }
  func.func @transform_2(%arg0: i32, %arg1: i32) -> (i32, i32, i32) {
    %c0_i32 = arith.constant 0 : i32
    %c0_i32_0 = arith.constant 0 : i32
    %c0_i32_1 = arith.constant 0 : i32
    %c0_i32_2 = arith.constant 0 : i32
    return %c0_i32, %c0_i32_0, %c0_i32_1 : i32, i32, i32
  }
  func.func @transform_3(%arg0: i32, %arg1: i32) -> (i32, i32, i32) {
    %c0_i32 = arith.constant 0 : i32
    %c0_i32_0 = arith.constant 0 : i32
    %c0_i32_1 = arith.constant 0 : i32
    %c0_i32_2 = arith.constant 0 : i32
    return %c0_i32, %c0_i32_0, %c0_i32_1 : i32, i32, i32
  }
  func.func @transform_4(%arg0: i32, %arg1: i32) -> (i32, i32, i32, i32, i32) {
    %c0_i32 = arith.constant 0 : i32
    %c0_i32_0 = arith.constant 0 : i32
    %c0_i32_1 = arith.constant 0 : i32
    %c0_i32_2 = arith.constant 0 : i32
    return %arg0, %arg1, %c0_i32, %c0_i32_0, %c0_i32_1 : i32, i32, i32, i32, i32
  }
}

module attributes {stable_mosaic.version = 11 : i64} {
  func.func @_dcgru_step_kernel(%arg0: i32, %arg1: i32, %arg2: memref<1x1x3x16x32xbf16, #tpu.memory_space<vmem>>, %arg3: memref<2x16x16xbf16, #tpu.memory_space<vmem>>, %arg4: memref<3x64x32xbf16, #tpu.memory_space<vmem>>, %arg5: memref<1x1x16x32xf32, #tpu.memory_space<vmem>>, %arg6: memref<16x32xf32, #tpu.memory_space<vmem>>) attributes {dimension_semantics = [#tpu.dimension_semantics<parallel>, #tpu.dimension_semantics<arbitrary>], iteration_bounds = array<i64: 2, 8>, scalar_prefetch = 0 : i64, scratch_operands = 1 : i64, tpu.core_type = #tpu.core_type<tc>, window_params = [{transform_indices = @transform_0, window_bounds = array<i64: 1, 1, 3, 16, 32>}, {pipeline_mode = #tpu.pipeline_mode<synchronous>, transform_indices = @transform_1, window_bounds = array<i64: 2, 16, 16>}, {pipeline_mode = #tpu.pipeline_mode<synchronous>, transform_indices = @transform_2, window_bounds = array<i64: 3, 64, 32>}, {transform_indices = @transform_3, window_bounds = array<i64: 1, 1, 16, 32>}]} {
    %c0_i32 = arith.constant 0 : i32
    %0 = arith.cmpi eq, %arg1, %c0_i32 : i32
    %1 = arith.extui %0 : i1 to i32
    %c0_i32_0 = arith.constant 0 : i32
    %2 = arith.cmpi ne, %1, %c0_i32_0 : i32
    scf.if %2 {
      %cst_51 = arith.constant 0.000000e+00 : f32
      %64 = vector.broadcast %cst_51 : f32 to vector<16x32xf32>
      %c0_52 = arith.constant 0 : index
      %c0_53 = arith.constant 0 : index
      %65 = vector.load %arg6[%c0_52, %c0_53] : memref<16x32xf32, #tpu.memory_space<vmem>>, vector<16x32xf32>
      tpu.vector_store %arg6[%c0_52, %c0_53], %64 {strides = array<i32>} : memref<16x32xf32, #tpu.memory_space<vmem>>, vector<16x32xf32>,
    } else {
    }
    %c0 = arith.constant 0 : index
    %c0_1 = arith.constant 0 : index
    %3 = vector.load %arg6[%c0, %c0_1] : memref<16x32xf32, #tpu.memory_space<vmem>>, vector<16x32xf32>
    %4 = arith.truncf %3 : vector<16x32xf32> to vector<16x32xbf16>
    %c0_2 = arith.constant 0 : index
    %c0_3 = arith.constant 0 : index
    %c0_4 = arith.constant 0 : index
    %5 = vector.load %arg3[%c0_2, %c0_3, %c0_4] : memref<2x16x16xbf16, #tpu.memory_space<vmem>>, vector<1x16x16xbf16>
    %6 = vector.shape_cast %5 : vector<1x16x16xbf16> to vector<16x16xbf16>
    %cst = arith.constant dense<0.000000e+00> : vector<16x32xf32>
    %7 = tpu.matmul %6, %4, %cst {dimension_numbers = #tpu.dot_dimension_numbers<[1], [0], [0], [1], [0, 0, 1, 1], [], []>} : vector<16x16xbf16>, vector<16x32xbf16>, vector<16x32xf32> -> vector<16x32xf32>
    %c1 = arith.constant 1 : index
    %c0_5 = arith.constant 0 : index
    %c0_6 = arith.constant 0 : index
    %8 = vector.load %arg3[%c1, %c0_5, %c0_6] : memref<2x16x16xbf16, #tpu.memory_space<vmem>>, vector<1x16x16xbf16>
    %9 = vector.shape_cast %8 : vector<1x16x16xbf16> to vector<16x16xbf16>
    %cst_7 = arith.constant dense<0.000000e+00> : vector<16x32xf32>
    %10 = tpu.matmul %9, %4, %cst_7 {dimension_numbers = #tpu.dot_dimension_numbers<[1], [0], [0], [1], [0, 0, 1, 1], [], []>} : vector<16x16xbf16>, vector<16x32xbf16>, vector<16x32xf32> -> vector<16x32xf32>
    %11 = tpu.concatenate %7, %10 in 1 : vector<16x32xf32>, vector<16x32xf32> -> vector<16x64xf32>
    %12 = arith.truncf %11 : vector<16x64xf32> to vector<16x64xbf16>
    %c0_8 = arith.constant 0 : index
    %c0_9 = arith.constant 0 : index
    %c0_10 = arith.constant 0 : index
    %c0_11 = arith.constant 0 : index
    %c0_12 = arith.constant 0 : index
    %13 = vector.load %arg2[%c0_8, %c0_9, %c0_10, %c0_11, %c0_12] : memref<1x1x3x16x32xbf16, #tpu.memory_space<vmem>>, vector<1x1x1x16x32xbf16>
    %14 = vector.shape_cast %13 : vector<1x1x1x16x32xbf16> to vector<16x32xbf16>
    %15 = arith.extf %14 : vector<16x32xbf16> to vector<16x32xf32>
    %c0_13 = arith.constant 0 : index
    %c0_14 = arith.constant 0 : index
    %c0_15 = arith.constant 0 : index
    %16 = vector.load %arg4[%c0_13, %c0_14, %c0_15] : memref<3x64x32xbf16, #tpu.memory_space<vmem>>, vector<1x64x32xbf16>
    %17 = vector.shape_cast %16 : vector<1x64x32xbf16> to vector<64x32xbf16>
    %cst_16 = arith.constant dense<0.000000e+00> : vector<16x32xf32>
    %18 = tpu.matmul %12, %17, %cst_16 {dimension_numbers = #tpu.dot_dimension_numbers<[1], [0], [0], [1], [0, 0, 1, 1], [], []>} : vector<16x64xbf16>, vector<64x32xbf16>, vector<16x32xf32> -> vector<16x32xf32>
    %19 = arith.addf %15, %18 : vector<16x32xf32>
    %20 = arith.negf %19 : vector<16x32xf32>
    %21 = math.exp %20 : vector<16x32xf32>
    %cst_17 = arith.constant 1.000000e+00 : f32
    %22 = vector.broadcast %cst_17 : f32 to vector<16x32xf32>
    %23 = arith.addf %22, %21 : vector<16x32xf32>
    %24 = arith.divf %22, %23 : vector<16x32xf32>
    %c0_18 = arith.constant 0 : index
    %c0_19 = arith.constant 0 : index
    %c1_20 = arith.constant 1 : index
    %c0_21 = arith.constant 0 : index
    %c0_22 = arith.constant 0 : index
    %25 = vector.load %arg2[%c0_18, %c0_19, %c1_20, %c0_21, %c0_22] : memref<1x1x3x16x32xbf16, #tpu.memory_space<vmem>>, vector<1x1x1x16x32xbf16>
    %26 = vector.shape_cast %25 : vector<1x1x1x16x32xbf16> to vector<16x32xbf16>
    %27 = arith.extf %26 : vector<16x32xbf16> to vector<16x32xf32>
    %c1_23 = arith.constant 1 : index
    %c0_24 = arith.constant 0 : index
    %c0_25 = arith.constant 0 : index
    %28 = vector.load %arg4[%c1_23, %c0_24, %c0_25] : memref<3x64x32xbf16, #tpu.memory_space<vmem>>, vector<1x64x32xbf16>
    %29 = vector.shape_cast %28 : vector<1x64x32xbf16> to vector<64x32xbf16>
    %cst_26 = arith.constant dense<0.000000e+00> : vector<16x32xf32>
    %30 = tpu.matmul %12, %29, %cst_26 {dimension_numbers = #tpu.dot_dimension_numbers<[1], [0], [0], [1], [0, 0, 1, 1], [], []>} : vector<16x64xbf16>, vector<64x32xbf16>, vector<16x32xf32> -> vector<16x32xf32>
    %31 = arith.addf %27, %30 : vector<16x32xf32>
    %32 = arith.negf %31 : vector<16x32xf32>
    %33 = math.exp %32 : vector<16x32xf32>
    %cst_27 = arith.constant 1.000000e+00 : f32
    %34 = vector.broadcast %cst_27 : f32 to vector<16x32xf32>
    %35 = arith.addf %34, %33 : vector<16x32xf32>
    %36 = arith.divf %34, %35 : vector<16x32xf32>
    %37 = arith.mulf %24, %3 : vector<16x32xf32>
    %38 = arith.truncf %37 : vector<16x32xf32> to vector<16x32xbf16>
    %c0_28 = arith.constant 0 : index
    %c0_29 = arith.constant 0 : index
    %c0_30 = arith.constant 0 : index
    %39 = vector.load %arg3[%c0_28, %c0_29, %c0_30] : memref<2x16x16xbf16, #tpu.memory_space<vmem>>, vector<1x16x16xbf16>
    %40 = vector.shape_cast %39 : vector<1x16x16xbf16> to vector<16x16xbf16>
    %cst_31 = arith.constant dense<0.000000e+00> : vector<16x32xf32>
    %41 = tpu.matmul %40, %38, %cst_31 {dimension_numbers = #tpu.dot_dimension_numbers<[1], [0], [0], [1], [0, 0, 1, 1], [], []>} : vector<16x16xbf16>, vector<16x32xbf16>, vector<16x32xf32> -> vector<16x32xf32>
    %c1_32 = arith.constant 1 : index
    %c0_33 = arith.constant 0 : index
    %c0_34 = arith.constant 0 : index
    %42 = vector.load %arg3[%c1_32, %c0_33, %c0_34] : memref<2x16x16xbf16, #tpu.memory_space<vmem>>, vector<1x16x16xbf16>
    %43 = vector.shape_cast %42 : vector<1x16x16xbf16> to vector<16x16xbf16>
    %cst_35 = arith.constant dense<0.000000e+00> : vector<16x32xf32>
    %44 = tpu.matmul %43, %38, %cst_35 {dimension_numbers = #tpu.dot_dimension_numbers<[1], [0], [0], [1], [0, 0, 1, 1], [], []>} : vector<16x16xbf16>, vector<16x32xbf16>, vector<16x32xf32> -> vector<16x32xf32>
    %45 = tpu.concatenate %41, %44 in 1 : vector<16x32xf32>, vector<16x32xf32> -> vector<16x64xf32>
    %46 = arith.truncf %45 : vector<16x64xf32> to vector<16x64xbf16>
    %c0_36 = arith.constant 0 : index
    %c0_37 = arith.constant 0 : index
    %c2 = arith.constant 2 : index
    %c0_38 = arith.constant 0 : index
    %c0_39 = arith.constant 0 : index
    %47 = vector.load %arg2[%c0_36, %c0_37, %c2, %c0_38, %c0_39] : memref<1x1x3x16x32xbf16, #tpu.memory_space<vmem>>, vector<1x1x1x16x32xbf16>
    %48 = vector.shape_cast %47 : vector<1x1x1x16x32xbf16> to vector<16x32xbf16>
    %49 = arith.extf %48 : vector<16x32xbf16> to vector<16x32xf32>
    %c2_40 = arith.constant 2 : index
    %c0_41 = arith.constant 0 : index
    %c0_42 = arith.constant 0 : index
    %50 = vector.load %arg4[%c2_40, %c0_41, %c0_42] : memref<3x64x32xbf16, #tpu.memory_space<vmem>>, vector<1x64x32xbf16>
    %51 = vector.shape_cast %50 : vector<1x64x32xbf16> to vector<64x32xbf16>
    %cst_43 = arith.constant dense<0.000000e+00> : vector<16x32xf32>
    %52 = tpu.matmul %46, %51, %cst_43 {dimension_numbers = #tpu.dot_dimension_numbers<[1], [0], [0], [1], [0, 0, 1, 1], [], []>} : vector<16x64xbf16>, vector<64x32xbf16>, vector<16x32xf32> -> vector<16x32xf32>
    %53 = arith.addf %49, %52 : vector<16x32xf32>
    %54 = math.tanh %53 : vector<16x32xf32>
    %55 = arith.mulf %36, %3 : vector<16x32xf32>
    %cst_44 = arith.constant 1.000000e+00 : f32
    %56 = vector.broadcast %cst_44 : f32 to vector<16x32xf32>
    %57 = arith.subf %56, %36 : vector<16x32xf32>
    %58 = arith.mulf %57, %54 : vector<16x32xf32>
    %59 = arith.addf %55, %58 : vector<16x32xf32>
    %c0_45 = arith.constant 0 : index
    %c0_46 = arith.constant 0 : index
    %60 = vector.load %arg6[%c0_45, %c0_46] : memref<16x32xf32, #tpu.memory_space<vmem>>, vector<16x32xf32>
    tpu.vector_store %arg6[%c0_45, %c0_46], %59 {strides = array<i32>} : memref<16x32xf32, #tpu.memory_space<vmem>>, vector<16x32xf32>,
    %c0_47 = arith.constant 0 : index
    %c0_48 = arith.constant 0 : index
    %c0_49 = arith.constant 0 : index
    %c0_50 = arith.constant 0 : index
    %61 = vector.load %arg5[%c0_47, %c0_48, %c0_49, %c0_50] : memref<1x1x16x32xf32, #tpu.memory_space<vmem>>, vector<1x1x16x32xf32>
    %62 = vector.shape_cast %61 : vector<1x1x16x32xf32> to vector<16x32xf32>
    %63 = vector.shape_cast %59 : vector<16x32xf32> to vector<1x1x16x32xf32>
    tpu.vector_store %arg5[%c0_47, %c0_48, %c0_49, %c0_50], %63 {strides = array<i32>} : memref<1x1x16x32xf32, #tpu.memory_space<vmem>>, vector<1x1x16x32xf32>,
    return
  }
  func.func @transform_0(%arg0: i32, %arg1: i32) -> (i32, i32, i32, i32, i32) {
    %c0_i32 = arith.constant 0 : i32
    %c0_i32_0 = arith.constant 0 : i32
    %c0_i32_1 = arith.constant 0 : i32
    %c0_i32_2 = arith.constant 0 : i32
    return %arg0, %arg1, %c0_i32, %c0_i32_0, %c0_i32_1 : i32, i32, i32, i32, i32
  }
  func.func @transform_1(%arg0: i32, %arg1: i32) -> (i32, i32, i32) {
    %c0_i32 = arith.constant 0 : i32
    %c0_i32_0 = arith.constant 0 : i32
    %c0_i32_1 = arith.constant 0 : i32
    %c0_i32_2 = arith.constant 0 : i32
    return %c0_i32, %c0_i32_0, %c0_i32_1 : i32, i32, i32
  }
  func.func @transform_2(%arg0: i32, %arg1: i32) -> (i32, i32, i32) {
    %c0_i32 = arith.constant 0 : i32
    %c0_i32_0 = arith.constant 0 : i32
    %c0_i32_1 = arith.constant 0 : i32
    %c0_i32_2 = arith.constant 0 : i32
    return %c0_i32, %c0_i32_0, %c0_i32_1 : i32, i32, i32
  }
  func.func @transform_3(%arg0: i32, %arg1: i32) -> (i32, i32, i32, i32) {
    %c0_i32 = arith.constant 0 : i32
    %c0_i32_0 = arith.constant 0 : i32
    %c0_i32_1 = arith.constant 0 : i32
    return %arg0, %arg1, %c0_i32, %c0_i32_0 : i32, i32, i32, i32
  }
}

module attributes {stable_mosaic.version = 11 : i64} {
  func.func @_gconv_x_kernel(%arg0: i32, %arg1: i32, %arg2: memref<1x1x16x32xbf16, #tpu.memory_space<vmem>>, %arg3: memref<2x16x16xbf16, #tpu.memory_space<vmem>>, %arg4: memref<3x64x32xbf16, #tpu.memory_space<vmem>>, %arg5: memref<3x1x32xf32, #tpu.memory_space<vmem>>, %arg6: memref<1x1x3x16x32xbf16, #tpu.memory_space<vmem>>) attributes {dimension_semantics = [#tpu.dimension_semantics<parallel>, #tpu.dimension_semantics<parallel>], iteration_bounds = array<i64: 2, 8>, scalar_prefetch = 0 : i64, scratch_operands = 0 : i64, tpu.core_type = #tpu.core_type<tc>, window_params = [{transform_indices = @transform_0, window_bounds = array<i64: 1, 1, 16, 32>}, {pipeline_mode = #tpu.pipeline_mode<synchronous>, transform_indices = @transform_1, window_bounds = array<i64: 2, 16, 16>}, {pipeline_mode = #tpu.pipeline_mode<synchronous>, transform_indices = @transform_2, window_bounds = array<i64: 3, 64, 32>}, {pipeline_mode = #tpu.pipeline_mode<synchronous>, transform_indices = @transform_3, window_bounds = array<i64: 3, 1, 32>}, {transform_indices = @transform_4, window_bounds = array<i64: 1, 1, 3, 16, 32>}]} {
    %c0 = arith.constant 0 : index
    %c0_0 = arith.constant 0 : index
    %c0_1 = arith.constant 0 : index
    %c0_2 = arith.constant 0 : index
    %0 = vector.load %arg2[%c0, %c0_0, %c0_1, %c0_2] : memref<1x1x16x32xbf16, #tpu.memory_space<vmem>>, vector<1x1x16x32xbf16>
    %1 = vector.shape_cast %0 : vector<1x1x16x32xbf16> to vector<16x32xbf16>
    %c0_3 = arith.constant 0 : index
    %c0_4 = arith.constant 0 : index
    %c0_5 = arith.constant 0 : index
    %2 = vector.load %arg3[%c0_3, %c0_4, %c0_5] : memref<2x16x16xbf16, #tpu.memory_space<vmem>>, vector<1x16x16xbf16>
    %3 = vector.shape_cast %2 : vector<1x16x16xbf16> to vector<16x16xbf16>
    %cst = arith.constant dense<0.000000e+00> : vector<16x32xf32>
    %4 = tpu.matmul %3, %1, %cst {dimension_numbers = #tpu.dot_dimension_numbers<[1], [0], [0], [1], [0, 0, 1, 1], [], []>} : vector<16x16xbf16>, vector<16x32xbf16>, vector<16x32xf32> -> vector<16x32xf32>
    %c1 = arith.constant 1 : index
    %c0_6 = arith.constant 0 : index
    %c0_7 = arith.constant 0 : index
    %5 = vector.load %arg3[%c1, %c0_6, %c0_7] : memref<2x16x16xbf16, #tpu.memory_space<vmem>>, vector<1x16x16xbf16>
    %6 = vector.shape_cast %5 : vector<1x16x16xbf16> to vector<16x16xbf16>
    %cst_8 = arith.constant dense<0.000000e+00> : vector<16x32xf32>
    %7 = tpu.matmul %6, %1, %cst_8 {dimension_numbers = #tpu.dot_dimension_numbers<[1], [0], [0], [1], [0, 0, 1, 1], [], []>} : vector<16x16xbf16>, vector<16x32xbf16>, vector<16x32xf32> -> vector<16x32xf32>
    %8 = tpu.concatenate %4, %7 in 1 : vector<16x32xf32>, vector<16x32xf32> -> vector<16x64xf32>
    %9 = arith.truncf %8 : vector<16x64xf32> to vector<16x64xbf16>
    %c0_9 = arith.constant 0 : index
    %c0_10 = arith.constant 0 : index
    %c0_11 = arith.constant 0 : index
    %10 = vector.load %arg4[%c0_9, %c0_10, %c0_11] : memref<3x64x32xbf16, #tpu.memory_space<vmem>>, vector<1x64x32xbf16>
    %11 = vector.shape_cast %10 : vector<1x64x32xbf16> to vector<64x32xbf16>
    %cst_12 = arith.constant dense<0.000000e+00> : vector<16x32xf32>
    %12 = tpu.matmul %9, %11, %cst_12 {dimension_numbers = #tpu.dot_dimension_numbers<[1], [0], [0], [1], [0, 0, 1, 1], [], []>} : vector<16x64xbf16>, vector<64x32xbf16>, vector<16x32xf32> -> vector<16x32xf32>
    %c0_13 = arith.constant 0 : index
    %c0_14 = arith.constant 0 : index
    %c0_15 = arith.constant 0 : index
    %13 = vector.load %arg5[%c0_13, %c0_14, %c0_15] : memref<3x1x32xf32, #tpu.memory_space<vmem>>, vector<1x1x32xf32>
    %14 = vector.shape_cast %13 : vector<1x1x32xf32> to vector<1x32xf32>
    %15 = vector.broadcast %14 : vector<1x32xf32> to vector<16x32xf32>
    %16 = arith.addf %12, %15 : vector<16x32xf32>
    %17 = arith.truncf %16 : vector<16x32xf32> to vector<16x32xbf16>
    %c0_16 = arith.constant 0 : index
    %c0_17 = arith.constant 0 : index
    %c0_18 = arith.constant 0 : index
    %c0_19 = arith.constant 0 : index
    %c0_20 = arith.constant 0 : index
    %18 = vector.load %arg6[%c0_16, %c0_17, %c0_18, %c0_19, %c0_20] : memref<1x1x3x16x32xbf16, #tpu.memory_space<vmem>>, vector<1x1x1x16x32xbf16>
    %19 = vector.shape_cast %18 : vector<1x1x1x16x32xbf16> to vector<16x32xbf16>
    %20 = vector.shape_cast %17 : vector<16x32xbf16> to vector<1x1x1x16x32xbf16>
    tpu.vector_store %arg6[%c0_16, %c0_17, %c0_18, %c0_19, %c0_20], %20 {strides = array<i32>} : memref<1x1x3x16x32xbf16, #tpu.memory_space<vmem>>, vector<1x1x1x16x32xbf16>,
    %c1_21 = arith.constant 1 : index
    %c0_22 = arith.constant 0 : index
    %c0_23 = arith.constant 0 : index
    %21 = vector.load %arg4[%c1_21, %c0_22, %c0_23] : memref<3x64x32xbf16, #tpu.memory_space<vmem>>, vector<1x64x32xbf16>
    %22 = vector.shape_cast %21 : vector<1x64x32xbf16> to vector<64x32xbf16>
    %cst_24 = arith.constant dense<0.000000e+00> : vector<16x32xf32>
    %23 = tpu.matmul %9, %22, %cst_24 {dimension_numbers = #tpu.dot_dimension_numbers<[1], [0], [0], [1], [0, 0, 1, 1], [], []>} : vector<16x64xbf16>, vector<64x32xbf16>, vector<16x32xf32> -> vector<16x32xf32>
    %c1_25 = arith.constant 1 : index
    %c0_26 = arith.constant 0 : index
    %c0_27 = arith.constant 0 : index
    %24 = vector.load %arg5[%c1_25, %c0_26, %c0_27] : memref<3x1x32xf32, #tpu.memory_space<vmem>>, vector<1x1x32xf32>
    %25 = vector.shape_cast %24 : vector<1x1x32xf32> to vector<1x32xf32>
    %26 = vector.broadcast %25 : vector<1x32xf32> to vector<16x32xf32>
    %27 = arith.addf %23, %26 : vector<16x32xf32>
    %28 = arith.truncf %27 : vector<16x32xf32> to vector<16x32xbf16>
    %c0_28 = arith.constant 0 : index
    %c0_29 = arith.constant 0 : index
    %c1_30 = arith.constant 1 : index
    %c0_31 = arith.constant 0 : index
    %c0_32 = arith.constant 0 : index
    %29 = vector.load %arg6[%c0_28, %c0_29, %c1_30, %c0_31, %c0_32] : memref<1x1x3x16x32xbf16, #tpu.memory_space<vmem>>, vector<1x1x1x16x32xbf16>
    %30 = vector.shape_cast %29 : vector<1x1x1x16x32xbf16> to vector<16x32xbf16>
    %31 = vector.shape_cast %28 : vector<16x32xbf16> to vector<1x1x1x16x32xbf16>
    tpu.vector_store %arg6[%c0_28, %c0_29, %c1_30, %c0_31, %c0_32], %31 {strides = array<i32>} : memref<1x1x3x16x32xbf16, #tpu.memory_space<vmem>>, vector<1x1x1x16x32xbf16>,
    %c2 = arith.constant 2 : index
    %c0_33 = arith.constant 0 : index
    %c0_34 = arith.constant 0 : index
    %32 = vector.load %arg4[%c2, %c0_33, %c0_34] : memref<3x64x32xbf16, #tpu.memory_space<vmem>>, vector<1x64x32xbf16>
    %33 = vector.shape_cast %32 : vector<1x64x32xbf16> to vector<64x32xbf16>
    %cst_35 = arith.constant dense<0.000000e+00> : vector<16x32xf32>
    %34 = tpu.matmul %9, %33, %cst_35 {dimension_numbers = #tpu.dot_dimension_numbers<[1], [0], [0], [1], [0, 0, 1, 1], [], []>} : vector<16x64xbf16>, vector<64x32xbf16>, vector<16x32xf32> -> vector<16x32xf32>
    %c2_36 = arith.constant 2 : index
    %c0_37 = arith.constant 0 : index
    %c0_38 = arith.constant 0 : index
    %35 = vector.load %arg5[%c2_36, %c0_37, %c0_38] : memref<3x1x32xf32, #tpu.memory_space<vmem>>, vector<1x1x32xf32>
    %36 = vector.shape_cast %35 : vector<1x1x32xf32> to vector<1x32xf32>
    %37 = vector.broadcast %36 : vector<1x32xf32> to vector<16x32xf32>
    %38 = arith.addf %34, %37 : vector<16x32xf32>
    %39 = arith.truncf %38 : vector<16x32xf32> to vector<16x32xbf16>
    %c0_39 = arith.constant 0 : index
    %c0_40 = arith.constant 0 : index
    %c2_41 = arith.constant 2 : index
    %c0_42 = arith.constant 0 : index
    %c0_43 = arith.constant 0 : index
    %40 = vector.load %arg6[%c0_39, %c0_40, %c2_41, %c0_42, %c0_43] : memref<1x1x3x16x32xbf16, #tpu.memory_space<vmem>>, vector<1x1x1x16x32xbf16>
    %41 = vector.shape_cast %40 : vector<1x1x1x16x32xbf16> to vector<16x32xbf16>
    %42 = vector.shape_cast %39 : vector<16x32xbf16> to vector<1x1x1x16x32xbf16>
    tpu.vector_store %arg6[%c0_39, %c0_40, %c2_41, %c0_42, %c0_43], %42 {strides = array<i32>} : memref<1x1x3x16x32xbf16, #tpu.memory_space<vmem>>, vector<1x1x1x16x32xbf16>,
    return
  }
  func.func @transform_0(%arg0: i32, %arg1: i32) -> (i32, i32, i32, i32) {
    %c0_i32 = arith.constant 0 : i32
    %c0_i32_0 = arith.constant 0 : i32
    %c0_i32_1 = arith.constant 0 : i32
    return %arg0, %arg1, %c0_i32, %c0_i32_0 : i32, i32, i32, i32
  }
  func.func @transform_1(%arg0: i32, %arg1: i32) -> (i32, i32, i32) {
    %c0_i32 = arith.constant 0 : i32
    %c0_i32_0 = arith.constant 0 : i32
    %c0_i32_1 = arith.constant 0 : i32
    %c0_i32_2 = arith.constant 0 : i32
    return %c0_i32, %c0_i32_0, %c0_i32_1 : i32, i32, i32
  }
  func.func @transform_2(%arg0: i32, %arg1: i32) -> (i32, i32, i32) {
    %c0_i32 = arith.constant 0 : i32
    %c0_i32_0 = arith.constant 0 : i32
    %c0_i32_1 = arith.constant 0 : i32
    %c0_i32_2 = arith.constant 0 : i32
    return %c0_i32, %c0_i32_0, %c0_i32_1 : i32, i32, i32
  }
  func.func @transform_3(%arg0: i32, %arg1: i32) -> (i32, i32, i32) {
    %c0_i32 = arith.constant 0 : i32
    %c0_i32_0 = arith.constant 0 : i32
    %c0_i32_1 = arith.constant 0 : i32
    %c0_i32_2 = arith.constant 0 : i32
    return %c0_i32, %c0_i32_0, %c0_i32_1 : i32, i32, i32
  }
  func.func @transform_4(%arg0: i32, %arg1: i32) -> (i32, i32, i32, i32, i32) {
    %c0_i32 = arith.constant 0 : i32
    %c0_i32_0 = arith.constant 0 : i32
    %c0_i32_1 = arith.constant 0 : i32
    %c0_i32_2 = arith.constant 0 : i32
    return %arg0, %arg1, %c0_i32, %c0_i32_0, %c0_i32_1 : i32, i32, i32, i32, i32
  }
}

</mosaic_0001>

<bundles_post_ra>
// kernel: dcrnn_encoder.4
= control target key start
LH: loop header
LB: loop body
LE: loop exit
PB: predicated region body
PF: predicated region fallthrough
CT: control target
= control target key end

     0   :  { %s857_s15 = smov 0   ;;  %s859_s16 = smov 0   ;;  %s949_s0 = inlined_call_operand.vmem [shape: bf16[2,8,16,4], index: 0, kind: input, shape index: {}]   ;;  %s950_s1 = inlined_call_operand.vmem [shape: bf16[2,16,16], index: 1, kind: input, shape index: {}]   ;;  %s951_s2 = inlined_call_operand.vmem [shape: bf16[3,8,32], index: 2, kind: input, shape index: {}]   ;;  %s952_s3 = inlined_call_operand.vmem [shape: f32[3,1,32], index: 3, kind: input, shape index: {}]   ;;  %s953_s4 = inlined_call_operand.vmem [shape: bf16[2,8,3,16,32], index: 4, kind: output, shape index: {}]  }
   0x1   :  { %s861_s17 = smov 0   ;;  %s863_s18 = smov 0  }
   0x2   :  { %s865_s19 = smov 0  }
   0x3 LB: > { %s23_s20 = sadd.s32 1, %s819_s17  ;;  %s26_s21 = sadd.s32 1, %s823_s18  ;;  %s827_s19 = sphi %s865_s19, %s14_s19   ;;  %s823_s18 = sphi %s863_s18, %s957_s18   ;;  %s819_s17 = sphi %s861_s17, %s956_s17   ;;  %s815_s16 = sphi %s859_s16, %s955_s16   ;;  %s811_s15 = sphi %s857_s15, %s954_s15  }
   0x4   : > { %p24_p0 = scmp.ge.s32.totalorder %s23_s20, 8  ;;  %p656_p1 = scmp.ge.s32.totalorder %s827_s19, 1 }
   0x5   : > { %p182_p2 = scmp.lt.s32.totalorder %s827_s19, 17 }
   0x6   : > { %s959_s20 = smov (%p24_p0, %s23_s20), 0  ;;  %s961_s21 = smov (!%p24_p0, %s26_s21), %s823_s18 }
   0x7   : > { %p183_p3 = pnand %p656_p1, %p182_p2  ;;  %p28_p4 = scmp.ge.s32.totalorder %s961_s21, 2 }
   0x8   : > { %p216_p5 = scmp.lt.s32.totalorder (!%p183_p3), %s815_s16, 1  ;;  %p218_p6 = scmp.lt.s32.totalorder (!%p183_p3), %s811_s15, 7  ;;  %v829_v0 = vmov (!%p183_p3), 0.0   ;;  %vm830_vm0 = vmmov (!%p183_p3), 0   ;;  %v787_v2 = vld [vmem:[%s950_s1 + $0x8] sm:$0xff] (!%p183_p3)   ;;  %v788_v3 = vld [vmem:[%s950_s1] sm:$0xff] (!%p183_p3)  }
   0x9   : > { %s963_s21 = smov (%p28_p4, %s961_s21), 0  ;;  %186 = sbr.rel (%p183_p3) target bundleno = 589 (0x24d), region = 36 }
   0xa   : > { %712 = vmatprep.subr.bf16.mxu1 (!%p183_p3), %v829_v0  ;;  %714 = vmatprep.mubr.msk.bf16.mxu1 (!%p183_p3), %vm830_vm0, %v829_v0  ;;  %vm250_vm1 = vcmask (!%p183_p3), 130048   ;;  %v359_v4 = vld [vmem:[%s951_s2] sm:$0xf] (!%p183_p3)  ;;  %vm371_vm2 = vcmask (!%p183_p3), 1043456   ;;  %v672_v6 = vld [vmem:[%s951_s2 + $0x4] sm:$0xf] (!%p183_p3) }
   0xb   : > { %706 = vmatprep.subr.bf16.mxu0 (!%p183_p3), %v829_v0  ;;  %708 = vmatprep.mubr.msk.bf16.mxu0 (!%p183_p3), %vm830_vm0, %v829_v0  ;;  %v373_v5 = vsel (!%p183_p3), %vm371_vm2, %v359_v4, 0  ;;  %v438_v7 = vsel (!%p183_p3), %vm371_vm2, %v672_v6, 0  ;;  %s831_s14 = smov (!%p183_p3), 4   ;;  %vm355_vm3 = vcmask (!%p183_p3), 31744   ;;  %v680_v20 = vld [vmem:[%s951_s2 + $0x8] sm:$0xf] (!%p183_p3) }
   0xc   : > { %vm367_vm4 = vcmask (!%p183_p3), 64512   ;;  %v503_v24 = vsel (!%p183_p3), %vm371_vm2, %v680_v20, 0  ;;  %v668_v25 = vld [vmem:[%s952_s3] ss:$0 sm:$0xff] (!%p183_p3)  ;;  %v674_v26 = vld [vmem:[%s952_s3 + $0x1] ss:$0 sm:$0xff] (!%p183_p3) }
   0xd   : > { %vm424_vm5 = vcmask (!%p183_p3), 257024   ;;  %v682_v43 = vld [vmem:[%s952_s3 + $0x2] ss:$0 sm:$0xff] (!%p183_p3) }
  0x10   : > { %s965_s16 = smov (!%p216_p5, %s815_s16), 1  ;;  %s967_s15 = smov (!%p218_p6, %s811_s15), 7 }
  0x11   : > { %s658_s22 = sshll.u32 %s965_s16, 4  ;;  %s737_s23 = smul.u32 48, %s965_s16 }
  0x12   : > { %s657_s24 = sshll.u32 %s967_s15, 1  ;;  %s736_s25 = smul.u32 6, %s967_s15 }
  0x13   : > { %s222_s26 = sadd.s32 %s658_s22, %s657_s24 }
  0x14   : > { %s659_s27 = sshll.u32 %s222_s26, 2  ;;  %s889_s28 = sadd.s32 %s737_s23, %s736_s25 }
  0x15   : > { %s224_s5 = scalar_lea.vmem %s949_s0, %s659_s27  ;;  %s660_s26 = sshll.u32 %s889_s28, 2 }
  0x16   : > { %v786_v1 = vld [vmem:[%s224_s5] sm:$0xff]   ;;  %s233_s30 = scalar_lea.vmem %s953_s4, %s660_s26 }
  0x17   : > { %713 = vmatpush3.bf16.msra.mxu1 %v786_v1  ;;  %707 = vmatpush3.bf16.msra.mxu0 %v786_v1 }
  0x18   : > { %718 = vmatprep.subr.bf16.mxu0 %v829_v0  ;;  %724 = vmatprep.subr.bf16.mxu1 %v829_v0 }
  0x1a   : > { %715 = vmatmul.mubr.msk.bf16.vlgmr.msra.gmra.mrb[0].mxu1 %vm250_vm1, %v787_v2  ;;  %709 = vmatmul.mubr.msk.bf16.vlgmr.msra.gmra.mrb[0].mxu0 %vm250_vm1, %v788_v3 }
  0x1b   : > { %720 = vmatprep.mubr.msk.bf16.mxu0 %vm830_vm0, %v829_v0  ;;  %726 = vmatprep.mubr.msk.bf16.mxu1 %vm830_vm0, %v829_v0 }
  0x1c   : > { %719 = vmatpush3.bf16.msra.mxu0 %v373_v5  ;;  %725 = vmatpush3.bf16.msra.mxu1 %v438_v7 }
  0x1d   : > { %730 = vmatprep.subr.bf16.mxu0 %v829_v0 }
  0xed   : > { %v340_v8 = vpop.f32.mrb[0].mxu1  ;;  %v288_v9 = vpop.f32.mrb[0].mxu0 }
  0xee   : > { %v716_v10 = vpop.f32.mrb[1].mxu1  ;;  %v710_v11 = vpop.f32.mrb[1].mxu0 }
  0xef   : > { %v343_v12 = vpop.f32.mrb[2].mxu1  ;;  %v291_v13 = vpop.f32.mrb[2].mxu0 }
  0xf0   : > { %v781_v14 = vpack.i.bf16 %v343_v12, %v340_v8  ;;  %v717_v15 = vpop.f32.mrb[3].mxu1  ;;  %v711_v16 = vpop.f32.mrb[3].mxu0 }
  0xf2   : > { %782 = vrot.lane.b32.xlu0 %v781_v14, %s831_s14 }
 0x164   : > { %v783_v17 = vpop.permute.xlu0 %782 }
 0x165   : > { %v785_v18 = vunpack.i.h.bf16 %v783_v17  ;;  %v784_v19 = vunpack.i.l.bf16 %v783_v17 }
 0x167   : > { %v356_v21 = vsel %vm355_vm3, %v288_v9, %v784_v19  ;;  %v357_v22 = vsel %vm355_vm3, %v291_v13, %v785_v18 }
 0x168   : > { %v358_v23 = vpack.c.bf16 %v357_v22, %v356_v21 }
 0x16a   : > { %721 = vmatmul.mubr.msk.bf16.vlgmr.msra.gmra.mrb[4].mxu0 %vm367_vm4, %v358_v23  ;;  %727 = vmatmul.mubr.msk.bf16.vlgmr.msra.gmra.mrb[4].mxu1 %vm367_vm4, %v358_v23 }
 0x16b   : > { %731 = vmatpush3.bf16.msra.mxu0 %v503_v24  ;;  %732 = vmatprep.mubr.msk.bf16.mxu0 %vm830_vm0, %v829_v0 }
 0x172   : > { %733 = vmatmul.mubr.msk.bf16.vlgmr.msra.gmra.mrb[8].mxu0 %vm367_vm4, %v358_v23 }
 0x23d   : > { %v409_v27 = vpop.f32.mrb[4].mxu0  ;;  %v474_v28 = vpop.f32.mrb[4].mxu1 }
 0x23e   : > { %v410_v29 = vadd.f32 %v668_v25, %v409_v27  ;;  %v475_v30 = vadd.f32 %v674_v26, %v474_v28  ;;  %v722_v31 = vpop.f32.mrb[5].mxu0  ;;  %v728_v32 = vpop.f32.mrb[5].mxu1 }
 0x23f   : > { %v412_v33 = vpop.f32.mrb[6].mxu0  ;;  %v477_v34 = vpop.f32.mrb[6].mxu1 }
 0x240   : > { %v690_v35 = vpack.c.bf16 %v410_v29, %v410_v29  ;;  %v692_v36 = vpack.c.bf16 %v475_v30, %v475_v30  ;;  %v413_v37 = vadd.f32 %v668_v25, %v412_v33  ;;  %v478_v38 = vadd.f32 %v674_v26, %v477_v34  ;;  %v723_v39 = vpop.f32.mrb[7].mxu0  ;;  %v729_v40 = vpop.f32.mrb[7].mxu1 }
 0x242   : > { %425 = vst.msk [vmem:[%s233_s30] sm:$0xf] %vm424_vm5, %v690_v35  ;;  %678 = vst.msk [vmem:[%s233_s30 + $0x8] sm:$0xf] %vm424_vm5, %v692_v36  ;;  %v691_v41 = vpack.c.bf16 %v413_v37, %v413_v37  ;;  %v693_v42 = vpack.c.bf16 %v478_v38, %v478_v38 }
 0x244   : > { %426 = vst.msk [vmem:[%s233_s30 + $0x4] sm:$0xf] %vm424_vm5, %v691_v41  ;;  %679 = vst.msk [vmem:[%s233_s30 + $0xc] sm:$0xf] %vm424_vm5, %v693_v42 }
 0x245   : > { %v539_v44 = vpop.f32.mrb[8].mxu0 }
 0x246   : > { %v540_v45 = vadd.f32 %v682_v43, %v539_v44  ;;  %v734_v46 = vpop.f32.mrb[9].mxu0 }
 0x247   : > { %v542_v47 = vpop.f32.mrb[10].mxu0 }
 0x248   : > { %v694_v48 = vpack.c.bf16 %v540_v45, %v540_v45  ;;  %v543_v49 = vadd.f32 %v682_v43, %v542_v47  ;;  %v735_v50 = vpop.f32.mrb[11].mxu0 }
 0x24a   : > { %686 = vst.msk [vmem:[%s233_s30 + $0x10] sm:$0xf] %vm424_vm5, %v694_v48  ;;  %v695_v51 = vpack.c.bf16 %v543_v49, %v543_v49 }
 0x24c   : > { %687 = vst.msk [vmem:[%s233_s30 + $0x14] sm:$0xf] %vm424_vm5, %v695_v51 }
 0x24d PF: > { %s14_s19 = sadd.s32 1, %s827_s19   ;;  %s954_s15 = smov %s819_s17 }
 0x24e   : > { %p11_p7 = scmp.ge.s32.totalorder %s14_s19, 18   ;;  %s955_s16 = smov %s823_s18 }
 0x24f   : > { %s956_s17 = smov %s959_s20  ;;  %s957_s18 = smov %s963_s21 }
 0x250   :  { %13 = sbr.rel (!%p11_p7) target bundleno = 3 (0x3), region = 73 }

// kernel: dcrnn_encoder.5
= control target key start
LH: loop header
LB: loop body
LE: loop exit
PB: predicated region body
PF: predicated region fallthrough
CT: control target
= control target key end

     0   :  { %s1121_s12 = smov 0   ;;  %s1123_s13 = smov 0   ;;  %s1293_s0 = inlined_call_operand.vmem [shape: bf16[2,8,3,16,32], index: 0, kind: input, shape index: {}]   ;;  %s1294_s1 = inlined_call_operand.vmem [shape: bf16[2,16,16], index: 1, kind: input, shape index: {}]   ;;  %s1295_s2 = inlined_call_operand.vmem [shape: bf16[3,64,32], index: 2, kind: input, shape index: {}]   ;;  %s1296_s3 = inlined_call_operand.vmem [shape: f32[2,8,16,32], index: 3, kind: output, shape index: {}]  }
   0x1   :  { %s1125_s14 = smov 0   ;;  %s1127_s15 = smov 0  }
   0x2   :  { %s1129_s16 = smov 0  }
   0x3 LB: > { %s22_s17 = sadd.s32 1, %s1087_s14  ;;  %s25_s18 = sadd.s32 1, %s1091_s15  ;;  %s1095_s16 = sphi %s1129_s16, %s13_s16   ;;  %s1091_s15 = sphi %s1127_s15, %s1300_s15   ;;  %s1087_s14 = sphi %s1125_s14, %s1299_s14   ;;  %s1083_s13 = sphi %s1123_s13, %s1298_s13   ;;  %s1079_s12 = sphi %s1121_s12, %s1297_s12  }
   0x4   : > { %p23_p0 = scmp.ge.s32.totalorder %s22_s17, 8  ;;  %p815_p1 = scmp.ge.s32.totalorder %s1095_s16, 1 }
   0x5   : > { %p157_p2 = scmp.lt.s32.totalorder %s1095_s16, 17 }
   0x6   : > { %s1302_s17 = smov (%p23_p0, %s22_s17), 0  ;;  %s1304_s18 = smov (!%p23_p0, %s25_s18), %s1091_s15 }
   0x7   : > { %p158_p3 = pnand %p815_p1, %p157_p2  ;;  %p27_p4 = scmp.ge.s32.totalorder %s1304_s18, 2 }
   0x8   : > { %p189_p5 = scmp.lt.s32.totalorder (!%p158_p3), %s1083_s13, 1  ;;  %p191_p6 = scmp.lt.s32.totalorder (!%p158_p3), %s1079_s12, 7 }
   0x9   : > { %s1306_s18 = smov (%p27_p4, %s1304_s18), 0  ;;  %161 = sbr.rel (%p158_p3) target bundleno = 1194 (0x4aa), region = 32 }
   0xa   : > { %p820_p7 = scmp.ne.s32.totalorder (!%p158_p3), %s1079_s12, 0 }
  0x10   : > { %s1308_s13 = smov (!%p189_p5, %s1083_s13), 1  ;;  %vm212_vm0 = vcmask (!%p820_p7), 261120   ;;  %v1097_v0 = vmov (!%p820_p7), 0.0  }
  0x11   : > { %s192_s19 = scalar_select %p191_p6, %s1079_s12, 7 }
  0x12   : > { %s968_s20 = smul.u32 48, %s1308_s13  ;;  %s818_s21 = sshll.u32 %s1308_s13, 4  ;;  %213 = vst.msk [vmem:[#allocation2] sm:$0xff] (!%p820_p7), %vm212_vm0, %v1097_v0  ;;  %214 = vst.msk [vmem:[#allocation2 + $0x8] sm:$0xff] (!%p820_p7), %vm212_vm0, %v1097_v0 }
  0x13   : > { %s967_s22 = smul.u32 6, %s192_s19  ;;  %s817_s23 = sshll.u32 %s192_s19, 1 }
  0x14   : > { %s204_s24 = sadd.s32 %s818_s21, %s817_s23  ;;  %211 = sbr.rel (%p820_p7) target bundleno = 27 (0x1b), region = 36 }
  0x15   : > { %s195_s25 = sadd.s32 %s968_s20, %s967_s22  ;;  %s819_s26 = sshll.u32 %s204_s24, 3 }
  0x16   : > { %s816_s27 = sshll.u32 %s195_s25, 2  ;;  %s1158_s30 = scalar_lea.vmem %s1296_s3, %s819_s26 }
  0x17   : > { %s1163_s6 = scalar_lea.vmem %s1293_s0, %s816_s27 }
  0x1b PF: > { %v1166_v1 = vld [vmem:[#allocation2] sm:$0xff]  ;;  %v1168_v2 = vld [vmem:[#allocation2 + $0x8] sm:$0xff]  ;;  %v1098_v4 = vmov 0.0   ;;  %vm1099_vm1 = vmmov 0   ;;  %vm225_vm2 = vcmask 130048   ;;  %v1029_v11 = vld [vmem:[%s1295_s2 + $0x10] sm:$0xff]  }
  0x1c   : > { %v1173_v3 = vld [vmem:[%s1294_s1 + $0x8] sm:$0xff]   ;;  %913 = vmatprep.subr.bf16.mxu1 %v1098_v4  ;;  %v217_v5 = vpack.c.bf16 %v1168_v2, %v1166_v1  ;;  %915 = vmatprep.mubr.msk.bf16.mxu1 %vm1099_vm1, %v1098_v4  ;;  %v1186_v6 = vld [vmem:[%s1294_s1] sm:$0xff]   ;;  %v1030_v12 = vld [vmem:[%s1295_s2 + $0x30] sm:$0xff]   ;;  %s1100_s7 = smov 32   ;;  %vm330_vm3 = vcmask 261120   ;;  %vm370_vm4 = vcmask 523264  }
  0x1d   : > { %907 = vmatprep.subr.bf16.mxu0 %v1098_v4  ;;  %909 = vmatprep.mubr.msk.bf16.mxu0 %vm1099_vm1, %v1098_v4  ;;  %v1025_v7 = vld [vmem:[%s1295_s2] sm:$0xff]   ;;  %v1027_v9 = vld [vmem:[%s1295_s2 + $0x8] sm:$0xff]   ;;  %v1031_v13 = vld [vmem:[%s1295_s2 + $0x18] sm:$0xff]  }
  0x1e   : > { %914 = vmatpush3.bf16.msra.mxu1 %v217_v5  ;;  %908 = vmatpush3.bf16.msra.mxu0 %v217_v5  ;;  %v1026_v8 = vld [vmem:[%s1295_s2 + $0x20] sm:$0xff]   ;;  %v1028_v10 = vld [vmem:[%s1295_s2 + $0x28] sm:$0xff]   ;;  %v1032_v14 = vld [vmem:[%s1295_s2 + $0x38] sm:$0xff]  }
  0x1f   : > { %919 = vmatprep.subr.bf16.mxu0 %v1098_v4  ;;  %931 = vmatprep.subr.bf16.mxu1 %v1098_v4  ;;  %v871_v30 = vld [vmem:[%s1163_s6] sm:$0xff]   ;;  %v1034_v55 = vld [vmem:[%s1295_s2 + $0x48] sm:$0xff]   ;;  %v1035_v56 = vld [vmem:[%s1295_s2 + $0x50] sm:$0xff]  }
  0x20   : > { %v872_v31 = vunpack.c.l.bf16 %v871_v30  ;;  %v873_v32 = vunpack.c.h.bf16 %v871_v30  ;;  %v1033_v54 = vld [vmem:[%s1295_s2 + $0x40] sm:$0xff]   ;;  %v1036_v59 = vld [vmem:[%s1295_s2 + $0x58] sm:$0xff]  }
  0x21   : > { %916 = vmatmul.mubr.msk.bf16.vlgmr.msra.gmra.mrb[0].mxu1 %vm225_vm2, %v1173_v3  ;;  %910 = vmatmul.mubr.msk.bf16.vlgmr.msra.gmra.mrb[0].mxu0 %vm225_vm2, %v1186_v6 }
  0x22   : > { %927 = vmatprep.mubr.msk.bf16.mxu0 %vm1099_vm1, %v1098_v4  ;;  %939 = vmatprep.mubr.msk.bf16.mxu1 %vm1099_vm1, %v1098_v4 }
  0x23   : > { %920 = vmatpush3.bf16.msra.mxu0 %v1025_v7  ;;  %932 = vmatpush3.bf16.msra.mxu1 %v1026_v8 }
  0x24   : > { %921 = vmatprep.subr.bf16.mxu0 %v1098_v4  ;;  %933 = vmatprep.subr.bf16.mxu1 %v1098_v4 }
  0x27   : > { %922 = vmatpush3.bf16.msra.mxu0 %v1027_v9  ;;  %934 = vmatpush3.bf16.msra.mxu1 %v1028_v10 }
  0x28   : > { %923 = vmatprep.subr.bf16.mxu0 %v1098_v4  ;;  %935 = vmatprep.subr.bf16.mxu1 %v1098_v4 }
  0x2b   : > { %924 = vmatpush3.bf16.msra.mxu0 %v1029_v11  ;;  %936 = vmatpush3.bf16.msra.mxu1 %v1030_v12  ;;  %v882_v11 = vld [vmem:[%s1163_s6 + $0x8] sm:$0xff]  }
  0x2c   : > { %925 = vmatprep.subr.bf16.mxu0 %v1098_v4  ;;  %937 = vmatprep.subr.bf16.mxu1 %v1098_v4  ;;  %v876_v12 = vunpack.c.l.bf16 %v882_v11 }
  0x2f   : > { %926 = vmatpush3.bf16.msra.mxu0 %v1031_v13  ;;  %938 = vmatpush3.bf16.msra.mxu1 %v1032_v14  ;;  %v877_v13 = vunpack.c.h.bf16 %v882_v11 }
  0x30   : > { %943 = vmatprep.subr.bf16.mxu1 %v1098_v4  ;;  %955 = vmatprep.subr.bf16.mxu0 %v1098_v4 }
  0xf4   : > { %v315_v15 = vpop.f32.mrb[0].mxu1  ;;  %v263_v16 = vpop.f32.mrb[0].mxu0 }
  0xf5   : > { %v917_v17 = vpop.f32.mrb[1].mxu1  ;;  %v911_v18 = vpop.f32.mrb[1].mxu0 }
  0xf6   : > { %v318_v19 = vpop.f32.mrb[2].mxu1  ;;  %v266_v20 = vpop.f32.mrb[2].mxu0 }
  0xf7   : > { %v1013_v21 = vpack.i.bf16 %v318_v19, %v315_v15  ;;  %v918_v22 = vpop.f32.mrb[3].mxu1  ;;  %v912_v23 = vpop.f32.mrb[3].mxu0 }
  0xf9   : > { %1014 = vrot.lane.b32.xlu0 %v1013_v21, %s1100_s7 }
 0x16b   : > { %v1015_v24 = vpop.permute.xlu0 %1014 }
 0x16c   : > { %v1017_v25 = vunpack.i.h.bf16 %v1015_v24  ;;  %v1016_v26 = vunpack.i.l.bf16 %v1015_v24 }
 0x16e   : > { %v331_v27 = vsel %vm330_vm3, %v263_v16, %v1016_v26  ;;  %v332_v28 = vsel %vm330_vm3, %v266_v20, %v1017_v25  ;;  %v883_v20 = vld [vmem:[%s1163_s6 + $0x10] sm:$0xff]  }
 0x16f   : > { %v333_v29 = vpack.c.bf16 %v332_v28, %v331_v27  ;;  %v880_v23 = vunpack.c.l.bf16 %v883_v20  ;;  %v881_v24 = vunpack.c.h.bf16 %v883_v20 }
 0x171   : > { %928 = vmatmul.mubr.msk.bf16.vlgmr.msra.gmra.mrb[4].mxu0 %vm370_vm4, %v333_v29  ;;  %940 = vmatmul.mubr.msk.bf16.vlgmr.msra.gmra.mrb[4].mxu1 %vm370_vm4, %v333_v29 }
 0x172   : > { %945 = vmatprep.mubr.msk.bf16.mxu1 %vm1099_vm1, %v1098_v4  ;;  %963 = vmatprep.mubr.msk.bf16.mxu0 %vm1099_vm1, %v1098_v4 }
 0x173   : > { %956 = vmatpush3.bf16.msra.mxu0 %v1033_v54 }
 0x174   : > { %957 = vmatprep.subr.bf16.mxu0 %v1098_v4 }
 0x177   : > { %958 = vmatpush3.bf16.msra.mxu0 %v1034_v55 }
 0x178   : > { %959 = vmatprep.subr.bf16.mxu0 %v1098_v4 }
 0x17b   : > { %960 = vmatpush3.bf16.msra.mxu0 %v1035_v56 }
 0x17c   : > { %961 = vmatprep.subr.bf16.mxu0 %v1098_v4 }
 0x17f   : > { %962 = vmatpush3.bf16.msra.mxu0 %v1036_v59 }
 0x244   : > { %v408_v33 = vpop.f32.mrb[4].mxu0  ;;  %v501_v34 = vpop.f32.mrb[4].mxu1 }
 0x245   : > { %v415_v35 = vadd.f32 %v872_v31, %v408_v33  ;;  %v929_v36 = vpop.f32.mrb[5].mxu0  ;;  %v941_v37 = vpop.f32.mrb[5].mxu1  ;;  %v508_v14 = vadd.f32 %v876_v12, %v501_v34 }
 0x246   : > { %v411_v38 = vpop.f32.mrb[6].mxu0  ;;  %v504_v39 = vpop.f32.mrb[6].mxu1 }
 0x247   : > { %v832_v40 = vmul.f32 -1.442695, %v415_v35  ;;  %v416_v41 = vadd.f32 %v873_v32, %v411_v38  ;;  %v930_v42 = vpop.f32.mrb[7].mxu0  ;;  %v942_v43 = vpop.f32.mrb[7].mxu1  ;;  %v509_v15 = vadd.f32 %v877_v13, %v504_v39  ;;  %v849_v16 = vmul.f32 -1.442695, %v508_v14 }
 0x249   : > { %1037 = vpow2.f32 %v832_v40  ;;  %v833_v44 = vmul.f32 -1.442695, %v416_v41  ;;  %v850_v17 = vmul.f32 -1.442695, %v509_v15 }
 0x24b   : > { %1039 = vpow2.f32 %v833_v44 }
 0x253   : > { %v1038_v45 = vpop.eup %1037 }
 0x254   : > { %v423_v46 = vadd.f32 1.0, %v1038_v45 }
 0x255   : > { %v1040_v47 = vpop.eup %1039 }
 0x256   : > { %1041 = vrcp.f32 %v423_v46  ;;  %v424_v48 = vadd.f32 1.0, %v1040_v47 }
 0x258   : > { %1043 = vrcp.f32 %v424_v48 }
 0x259   : > { %1045 = vpow2.f32 %v849_v16 }
 0x25a   : > { %1047 = vpow2.f32 %v850_v17 }
 0x260   : > { %v1042_v49 = vpop.eup %1041 }
 0x261   : > { %v522_v51 = vmul.f32 %v1042_v49, %v1166_v1 }
 0x262   : > { %v1044_v50 = vpop.eup %1043 }
 0x263   : > { %v523_v52 = vmul.f32 %v1044_v50, %v1168_v2  ;;  %v1046_v18 = vpop.eup %1045 }
 0x264   : > { %v1048_v19 = vpop.eup %1047  ;;  %v516_v21 = vadd.f32 1.0, %v1046_v18 }
 0x265   : > { %v524_v53 = vpack.c.bf16 %v523_v52, %v522_v51  ;;  %v517_v22 = vadd.f32 1.0, %v1048_v19 }
 0x266   : > { %1049 = vrcp.f32 %v516_v21 }
 0x267   : > { %944 = vmatpush3.bf16.msra.mxu1 %v524_v53  ;;  %1051 = vrcp.f32 %v517_v22 }
 0x268   : > { %949 = vmatprep.subr.bf16.mxu1 %v1098_v4 }
 0x26a   : > { %946 = vmatmul.mubr.msk.bf16.vlgmr.msra.gmra.mrb[8].mxu1 %vm225_vm2, %v1186_v6 }
 0x26b   : > { %950 = vmatpush3.bf16.msra.mxu1 %v524_v53  ;;  %951 = vmatprep.mubr.msk.bf16.mxu1 %vm1099_vm1, %v1098_v4 }
 0x270   : > { %v1050_v31 = vpop.eup %1049 }
 0x271   : > { %v1052_v32 = vpop.eup %1051  ;;  %v706_v33 = vsub.f32 1.0, %v1050_v31  ;;  %v704_v35 = vmul.f32 %v1050_v31, %v1166_v1 }
 0x272   : > { %952 = vmatmul.mubr.msk.bf16.vlgmr.msra.gmra.mrb[12].mxu1 %vm225_vm2, %v1173_v3  ;;  %v707_v37 = vsub.f32 1.0, %v1052_v32  ;;  %v705_v39 = vmul.f32 %v1052_v32, %v1168_v2 }
 0x33d   : > { %v559_v57 = vpop.f32.mrb[8].mxu1 }
 0x33e   : > { %v947_v58 = vpop.f32.mrb[9].mxu1 }
 0x33f   : > { %v562_v60 = vpop.f32.mrb[10].mxu1 }
 0x340   : > { %v948_v61 = vpop.f32.mrb[11].mxu1 }
 0x345   : > { %v600_v62 = vpop.f32.mrb[12].mxu1 }
 0x346   : > { %v953_v63 = vpop.f32.mrb[13].mxu1 }
 0x347   : > { %v603_v0 = vpop.f32.mrb[14].mxu1 }
 0x348   : > { %v1018_v3 = vpack.i.bf16 %v603_v0, %v600_v62  ;;  %v954_v5 = vpop.f32.mrb[15].mxu1 }
 0x34a   : > { %1019 = vrot.lane.b32.xlu0 %v1018_v3, %s1100_s7 }
 0x3bc   : > { %v1020_v6 = vpop.permute.xlu0 %1019 }
 0x3bd   : > { %v1022_v7 = vunpack.i.h.bf16 %v1020_v6  ;;  %v1021_v4 = vunpack.i.l.bf16 %v1020_v6 }
 0x3bf   : > { %v616_v8 = vsel %vm330_vm3, %v562_v60, %v1022_v7  ;;  %v615_v9 = vsel %vm330_vm3, %v559_v57, %v1021_v4 }
 0x3c0   : > { %v617_v10 = vpack.c.bf16 %v616_v8, %v615_v9 }
 0x3c2   : > { %964 = vmatmul.mubr.msk.bf16.vlgmr.msra.gmra.mrb[8].mxu0 %vm370_vm4, %v617_v10 }
 0x495   : > { %v693_v25 = vpop.f32.mrb[8].mxu0 }
 0x496   : > { %v700_v26 = vadd.f32 %v880_v23, %v693_v25  ;;  %v965_v27 = vpop.f32.mrb[9].mxu0 }
 0x497   : > { %v696_v28 = vpop.f32.mrb[10].mxu0 }
 0x498   : > { %1053 = vtanh.f32 %v700_v26  ;;  %v701_v29 = vadd.f32 %v881_v24, %v696_v28  ;;  %v966_v30 = vpop.f32.mrb[11].mxu0 }
 0x49a   : > { %1055 = vtanh.f32 %v701_v29 }
 0x4a2   : > { %v1054_v34 = vpop.eup %1053 }
 0x4a3   : > { %v708_v36 = vmul.f32 %v1054_v34, %v706_v33 }
 0x4a4   : > { %v1056_v38 = vpop.eup %1055 }
 0x4a5   : > { %v710_v40 = vadd.f32 %v708_v36, %v704_v35  ;;  %v709_v41 = vmul.f32 %v1056_v38, %v707_v37 }
 0x4a7   : > { %712 = vst.msk [vmem:[#allocation2] sm:$0xff] %vm330_vm3, %v710_v40  ;;  %714 = vst.msk [vmem:[%s1158_s30] sm:$0xff] %vm330_vm3, %v710_v40  ;;  %v711_v42 = vadd.f32 %v709_v41, %v705_v39 }
 0x4a9   : > { %713 = vst.msk [vmem:[#allocation2 + $0x8] sm:$0xff] %vm330_vm3, %v711_v42  ;;  %715 = vst.msk [vmem:[%s1158_s30 + $0x8] sm:$0xff] %vm330_vm3, %v711_v42 }
 0x4aa PF: > { %s13_s16 = sadd.s32 1, %s1095_s16   ;;  %s1297_s12 = smov %s1087_s14 }
 0x4ab   : > { %p10_p8 = scmp.ge.s32.totalorder %s13_s16, 18   ;;  %s1298_s13 = smov %s1091_s15 }
 0x4ac   : > { %s1299_s14 = smov %s1302_s17  ;;  %s1300_s15 = smov %s1306_s18 }
 0x4ad   :  { %12 = sbr.rel (!%p10_p8) target bundleno = 3 (0x3), region = 71 }

// kernel: dcrnn_encoder.6
= control target key start
LH: loop header
LB: loop body
LE: loop exit
PB: predicated region body
PF: predicated region fallthrough
CT: control target
= control target key end

     0   :  { %s1005_s15 = smov 0   ;;  %s1007_s16 = smov 0   ;;  %s1143_s0 = inlined_call_operand.vmem [shape: bf16[2,8,16,32], index: 0, kind: input, shape index: {}]   ;;  %s1144_s1 = inlined_call_operand.vmem [shape: bf16[2,16,16], index: 1, kind: input, shape index: {}]   ;;  %s1145_s2 = inlined_call_operand.vmem [shape: bf16[3,64,32], index: 2, kind: input, shape index: {}]   ;;  %s1146_s3 = inlined_call_operand.vmem [shape: f32[3,1,32], index: 3, kind: input, shape index: {}]   ;;  %s1147_s4 = inlined_call_operand.vmem [shape: bf16[2,8,3,16,32], index: 4, kind: output, shape index: {}]  }
   0x1   :  { %s1009_s17 = smov 0   ;;  %s1011_s18 = smov 0  }
   0x2   :  { %s1013_s19 = smov 0  }
   0x3 LB: > { %s23_s20 = sadd.s32 1, %s967_s17  ;;  %s26_s21 = sadd.s32 1, %s971_s18  ;;  %s975_s19 = sphi %s1013_s19, %s14_s19   ;;  %s971_s18 = sphi %s1011_s18, %s1151_s18   ;;  %s967_s17 = sphi %s1009_s17, %s1150_s17   ;;  %s963_s16 = sphi %s1007_s16, %s1149_s16   ;;  %s959_s15 = sphi %s1005_s15, %s1148_s15  }
   0x4   : > { %p24_p0 = scmp.ge.s32.totalorder %s23_s20, 8  ;;  %p739_p1 = scmp.ge.s32.totalorder %s975_s19, 1 }
   0x5   : > { %p182_p2 = scmp.lt.s32.totalorder %s975_s19, 17 }
   0x6   : > { %s1153_s20 = smov (%p24_p0, %s23_s20), 0  ;;  %s1155_s21 = smov (!%p24_p0, %s26_s21), %s971_s18 }
   0x7   : > { %p183_p3 = pnand %p739_p1, %p182_p2  ;;  %p28_p4 = scmp.ge.s32.totalorder %s1155_s21, 2 }
   0x8   : > { %p216_p5 = scmp.lt.s32.totalorder (!%p183_p3), %s963_s16, 1  ;;  %p218_p6 = scmp.lt.s32.totalorder (!%p183_p3), %s959_s15, 7  ;;  %v977_v0 = vmov (!%p183_p3), 0.0   ;;  %vm978_vm0 = vmmov (!%p183_p3), 0   ;;  %v923_v1 = vld [vmem:[%s1144_s1] sm:$0xff] (!%p183_p3)   ;;  %vm250_vm1 = vcmask (!%p183_p3), 130048  }
   0x9   : > { %s1157_s21 = smov (%p28_p4, %s1155_s21), 0  ;;  %186 = sbr.rel (%p183_p3) target bundleno = 605 (0x25d), region = 36 }
   0xa   : > { %824 = vmatprep.subr.bf16.mxu1 (!%p183_p3), %v977_v0  ;;  %826 = vmatprep.mubr.msk.bf16.mxu1 (!%p183_p3), %vm978_vm0, %v977_v0  ;;  %v924_v3 = vld [vmem:[%s1144_s1 + $0x8] sm:$0xff] (!%p183_p3)   ;;  %v925_v4 = vld [vmem:[%s1145_s2] sm:$0xff] (!%p183_p3)   ;;  %v929_v8 = vld [vmem:[%s1145_s2 + $0x10] sm:$0xff] (!%p183_p3)   ;;  %s979_s6 = smov (!%p183_p3), 32   ;;  %vm355_vm2 = vcmask (!%p183_p3), 261120   ;;  %vm398_vm3 = vcmask (!%p183_p3), 523264  }
   0xb   : > { %836 = vmatprep.subr.bf16.mxu0 (!%p183_p3), %v977_v0  ;;  %844 = vmatprep.mubr.msk.bf16.mxu0 (!%p183_p3), %vm978_vm0, %v977_v0  ;;  %v926_v5 = vld [vmem:[%s1145_s2 + $0x20] sm:$0xff] (!%p183_p3)   ;;  %v927_v6 = vld [vmem:[%s1145_s2 + $0x8] sm:$0xff] (!%p183_p3)   ;;  %v930_v9 = vld [vmem:[%s1145_s2 + $0x30] sm:$0xff] (!%p183_p3)   ;;  %vm451_vm4 = vcmask (!%p183_p3), 257024  }
   0xc   : > { %837 = vmatpush3.bf16.msra.mxu0 (!%p183_p3), %v925_v4  ;;  %v928_v7 = vld [vmem:[%s1145_s2 + $0x28] sm:$0xff] (!%p183_p3)   ;;  %v931_v10 = vld [vmem:[%s1145_s2 + $0x18] sm:$0xff] (!%p183_p3)   ;;  %v933_v26 = vld [vmem:[%s1145_s2 + $0x40] sm:$0xff] (!%p183_p3)  }
   0xd   : > { %838 = vmatprep.subr.bf16.mxu0 (!%p183_p3), %v977_v0  ;;  %v932_v12 = vld [vmem:[%s1145_s2 + $0x38] sm:$0xff] (!%p183_p3)   ;;  %v934_v28 = vld [vmem:[%s1145_s2 + $0x48] sm:$0xff] (!%p183_p3)   ;;  %v935_v29 = vld [vmem:[%s1145_s2 + $0x50] sm:$0xff] (!%p183_p3)  }
   0xe   : > { %v936_v30 = vld [vmem:[%s1145_s2 + $0x58] sm:$0xff] (!%p183_p3)   ;;  %v751_v31 = vld [vmem:[%s1146_s3] ss:$0 sm:$0xff] (!%p183_p3)  ;;  %v768_v32 = vld [vmem:[%s1146_s3 + $0x1] ss:$0 sm:$0xff] (!%p183_p3) }
   0xf   : > { %v787_v49 = vld [vmem:[%s1146_s3 + $0x2] ss:$0 sm:$0xff] (!%p183_p3) }
  0x10   : > { %s1159_s16 = smov (!%p216_p5, %s963_s16), 1  ;;  %s1161_s15 = smov (!%p218_p6, %s959_s15), 7  ;;  %839 = vmatpush3.bf16.msra.mxu0 %v927_v6 }
  0x11   : > { %s741_s22 = sshll.u32 %s1159_s16, 4  ;;  %s873_s23 = smul.u32 48, %s1159_s16  ;;  %840 = vmatprep.subr.bf16.mxu0 %v977_v0 }
  0x12   : > { %s740_s24 = sshll.u32 %s1161_s15, 1  ;;  %s872_s25 = smul.u32 6, %s1161_s15 }
  0x13   : > { %s222_s26 = sadd.s32 %s741_s22, %s740_s24 }
  0x14   : > { %s742_s27 = sshll.u32 %s222_s26, 2  ;;  %s1041_s28 = sadd.s32 %s873_s23, %s872_s25  ;;  %841 = vmatpush3.bf16.msra.mxu0 %v929_v8 }
  0x15   : > { %s224_s5 = scalar_lea.vmem %s1143_s0, %s742_s27  ;;  %842 = vmatprep.subr.bf16.mxu0 %v977_v0  ;;  %s743_s24 = sshll.u32 %s1041_s28, 2 }
  0x16   : > { %v922_v2 = vld [vmem:[%s224_s5] sm:$0xff]   ;;  %s233_s27 = scalar_lea.vmem %s1147_s4, %s743_s24 }
  0x17   : > { %825 = vmatpush3.bf16.msra.mxu1 %v922_v2 }
  0x18   : > { %830 = vmatprep.subr.bf16.mxu1 %v977_v0  ;;  %843 = vmatpush3.bf16.msra.mxu0 %v931_v10 }
  0x19   : > { %860 = vmatprep.subr.bf16.mxu0 %v977_v0 }
  0x1a   : > { %827 = vmatmul.mubr.msk.bf16.vlgmr.msra.gmra.mrb[0].mxu1 %vm250_vm1, %v923_v1 }
  0x1b   : > { %831 = vmatpush3.bf16.msra.mxu1 %v922_v2  ;;  %832 = vmatprep.mubr.msk.bf16.mxu1 %vm978_vm0, %v977_v0 }
  0x1c   : > { %848 = vmatprep.subr.bf16.mxu1 %v977_v0 }
  0x22   : > { %833 = vmatmul.mubr.msk.bf16.vlgmr.msra.gmra.mrb[4].mxu1 %vm250_vm1, %v924_v3 }
  0x23   : > { %856 = vmatprep.mubr.msk.bf16.mxu1 %vm978_vm0, %v977_v0  ;;  %849 = vmatpush3.bf16.msra.mxu1 %v926_v5 }
  0x24   : > { %850 = vmatprep.subr.bf16.mxu1 %v977_v0 }
  0x27   : > { %851 = vmatpush3.bf16.msra.mxu1 %v928_v7 }
  0x28   : > { %852 = vmatprep.subr.bf16.mxu1 %v977_v0 }
  0x2b   : > { %853 = vmatpush3.bf16.msra.mxu1 %v930_v9 }
  0x2c   : > { %854 = vmatprep.subr.bf16.mxu1 %v977_v0 }
  0x2f   : > { %855 = vmatpush3.bf16.msra.mxu1 %v932_v12 }
  0xed   : > { %v288_v11 = vpop.f32.mrb[0].mxu1 }
  0xee   : > { %v828_v13 = vpop.f32.mrb[1].mxu1 }
  0xef   : > { %v291_v14 = vpop.f32.mrb[2].mxu1 }
  0xf0   : > { %v829_v15 = vpop.f32.mrb[3].mxu1 }
  0xf5   : > { %v340_v16 = vpop.f32.mrb[4].mxu1 }
  0xf6   : > { %v834_v17 = vpop.f32.mrb[5].mxu1 }
  0xf7   : > { %v343_v18 = vpop.f32.mrb[6].mxu1 }
  0xf8   : > { %v917_v19 = vpack.i.bf16 %v343_v18, %v340_v16  ;;  %v835_v20 = vpop.f32.mrb[7].mxu1 }
  0xfa   : > { %918 = vrot.lane.b32.xlu0 %v917_v19, %s979_s6 }
 0x16c   : > { %v919_v21 = vpop.permute.xlu0 %918 }
 0x16d   : > { %v921_v22 = vunpack.i.h.bf16 %v919_v21  ;;  %v920_v23 = vunpack.i.l.bf16 %v919_v21 }
 0x16f   : > { %v357_v24 = vsel %vm355_vm2, %v291_v14, %v921_v22  ;;  %v356_v25 = vsel %vm355_vm2, %v288_v11, %v920_v23 }
 0x170   : > { %v358_v27 = vpack.c.bf16 %v357_v24, %v356_v25 }
 0x172   : > { %845 = vmatmul.mubr.msk.bf16.vlgmr.msra.gmra.mrb[0].mxu0 %vm398_vm3, %v358_v27  ;;  %857 = vmatmul.mubr.msk.bf16.vlgmr.msra.gmra.mrb[8].mxu1 %vm398_vm3, %v358_v27 }
 0x173   : > { %861 = vmatpush3.bf16.msra.mxu0 %v933_v26  ;;  %868 = vmatprep.mubr.msk.bf16.mxu0 %vm978_vm0, %v977_v0 }
 0x174   : > { %862 = vmatprep.subr.bf16.mxu0 %v977_v0 }
 0x177   : > { %863 = vmatpush3.bf16.msra.mxu0 %v934_v28 }
 0x178   : > { %864 = vmatprep.subr.bf16.mxu0 %v977_v0 }
 0x17b   : > { %865 = vmatpush3.bf16.msra.mxu0 %v935_v29 }
 0x17c   : > { %866 = vmatprep.subr.bf16.mxu0 %v977_v0 }
 0x17f   : > { %867 = vmatpush3.bf16.msra.mxu0 %v936_v30 }
 0x182   : > { %869 = vmatmul.mubr.msk.bf16.vlgmr.msra.gmra.mrb[4].mxu0 %vm398_vm3, %v358_v27 }
 0x245   : > { %v436_v33 = vpop.f32.mrb[0].mxu0  ;;  %v529_v34 = vpop.f32.mrb[8].mxu1 }
 0x246   : > { %v437_v35 = vadd.f32 %v751_v31, %v436_v33  ;;  %v530_v36 = vadd.f32 %v768_v32, %v529_v34  ;;  %v846_v37 = vpop.f32.mrb[1].mxu0  ;;  %v858_v38 = vpop.f32.mrb[9].mxu1 }
 0x247   : > { %v439_v39 = vpop.f32.mrb[2].mxu0  ;;  %v532_v40 = vpop.f32.mrb[10].mxu1 }
 0x248   : > { %v799_v41 = vpack.c.bf16 %v437_v35, %v437_v35  ;;  %v801_v42 = vpack.c.bf16 %v530_v36, %v530_v36  ;;  %v440_v43 = vadd.f32 %v751_v31, %v439_v39  ;;  %v533_v44 = vadd.f32 %v768_v32, %v532_v40  ;;  %v847_v45 = vpop.f32.mrb[3].mxu0  ;;  %v859_v46 = vpop.f32.mrb[11].mxu1 }
 0x24a   : > { %452 = vst.msk [vmem:[%s233_s27] sm:$0xf] %vm451_vm4, %v799_v41  ;;  %776 = vst.msk [vmem:[%s233_s27 + $0x8] sm:$0xf] %vm451_vm4, %v801_v42  ;;  %v800_v47 = vpack.c.bf16 %v440_v43, %v440_v43  ;;  %v802_v48 = vpack.c.bf16 %v533_v44, %v533_v44 }
 0x24c   : > { %453 = vst.msk [vmem:[%s233_s27 + $0x4] sm:$0xf] %vm451_vm4, %v800_v47  ;;  %777 = vst.msk [vmem:[%s233_s27 + $0xc] sm:$0xf] %vm451_vm4, %v802_v48 }
 0x255   : > { %v622_v50 = vpop.f32.mrb[4].mxu0 }
 0x256   : > { %v623_v51 = vadd.f32 %v787_v49, %v622_v50  ;;  %v870_v52 = vpop.f32.mrb[5].mxu0 }
 0x257   : > { %v625_v53 = vpop.f32.mrb[6].mxu0 }
 0x258   : > { %v803_v54 = vpack.c.bf16 %v623_v51, %v623_v51  ;;  %v626_v55 = vadd.f32 %v787_v49, %v625_v53  ;;  %v871_v56 = vpop.f32.mrb[7].mxu0 }
 0x25a   : > { %795 = vst.msk [vmem:[%s233_s27 + $0x10] sm:$0xf] %vm451_vm4, %v803_v54  ;;  %v804_v57 = vpack.c.bf16 %v626_v55, %v626_v55 }
 0x25c   : > { %796 = vst.msk [vmem:[%s233_s27 + $0x14] sm:$0xf] %vm451_vm4, %v804_v57 }
 0x25d PF: > { %s14_s19 = sadd.s32 1, %s975_s19   ;;  %s1148_s15 = smov %s967_s17 }
 0x25e   : > { %p11_p7 = scmp.ge.s32.totalorder %s14_s19, 18   ;;  %s1149_s16 = smov %s971_s18 }
 0x25f   : > { %s1150_s17 = smov %s1153_s20  ;;  %s1151_s18 = smov %s1157_s21 }
 0x260   :  { %13 = sbr.rel (!%p11_p7) target bundleno = 3 (0x3), region = 73 }

</bundles_post_ra>
